<compile_context>
chip_gen: v5e
topology: v5e:2x2
jax: 0.10.0
libtpu: 0.0.40
codegen_flags: <defaults>
</compile_context>

<pallas_src>
import math
import functools

import jax
import jax.numpy as jnp
from jax import lax
from jax.experimental import pallas as pl
from jax.experimental.pallas import tpu as pltpu


def encoder_kernel(x_ref, wqkv_ref, bqkv_ref, wo_ref, bo_ref, o_ref,
                   act_ref, ctx_ref,
                   *, n_layer, heads, d_k, d_model, bblk, seq_len):
    """Runs all n_layer self-attention layers on a (bblk, L, d_model) block."""
    # Activation stays in VMEM (f32) across all layers.
    act_ref[...] = x_ref[...].astype(jnp.float32)
    inv_sqrt_dk = 1.0 / math.sqrt(d_k)

    for lyr in range(n_layer):                       # static, unrolled
        # Fused Q/K/V projection, batched over all rows of this block:
        # (bblk*L, d_model) @ (d_model, 3*d_model)
        x2 = act_ref[...].reshape(bblk * seq_len, d_model)
        qkv = jnp.dot(x2, wqkv_ref[lyr],
                      preferred_element_type=jnp.float32) + bqkv_ref[lyr]
        qkv = qkv.reshape(bblk, seq_len, 3 * d_model)

        # Per (batch, head) attention; heads/bblk are tiny & static -> unrolled
        # loops with static lane slices.  Head outputs go into static lane
        # slices of ctx_ref so one Wo matmul covers the whole block.
        for b in range(bblk):
            for h in range(heads):
                lo = h * d_k
                qh = qkv[b, :, lo:lo + d_k]                               # (L, d_k)
                kh = qkv[b, :, d_model + lo:d_model + lo + d_k]           # (L, d_k)
                vh = qkv[b, :, 2 * d_model + lo:2 * d_model + lo + d_k]   # (L, d_k)

                # scores = qh @ kh^T without an explicit transpose.
                s = lax.dot_general(qh, kh, (((1,), (1,)), ((), ())),
                                    preferred_element_type=jnp.float32) * inv_sqrt_dk
                m = jnp.max(s, axis=-1, keepdims=True)
                p = jnp.exp(s - m)
                p = p * pl.reciprocal(jnp.sum(p, axis=-1, keepdims=True),
                                      approx=True)
                ctx_ref[b, :, lo:lo + d_k] = jnp.dot(
                    p, vh, preferred_element_type=jnp.float32)            # (L, d_k)

        # Single output projection for the whole block:
        # (bblk*L, d_model) @ (d_model, d_model)
        ctx2 = ctx_ref[...].reshape(bblk * seq_len, d_model)
        out2 = jnp.dot(ctx2, wo_ref[lyr],
                       preferred_element_type=jnp.float32) + bo_ref[lyr]
        act_ref[...] = out2.reshape(bblk, seq_len, d_model)

    o_ref[...] = act_ref[...].astype(o_ref.dtype)


def pack_encoder_params(params_per_layer):
    """PyTorch-style (out,in) weights -> stacked, pre-transposed kernel operands.

    Returns:
      wqkv: (n_layer, d_model, 3*d_model)   -- [W_q^T | W_k^T | W_v^T]
      bqkv: (n_layer, 1, 3*d_model)
      wo:   (n_layer, d_model, d_model)     -- W_o^T
      bo:   (n_layer, 1, d_model)
    """
    wqkv_l, bqkv_l, wo_l, bo_l = [], [], [], []
    for (wq, bq, wk, bk, wv, bv, wo, bo) in params_per_layer:
        d_model = wq.shape[0]
        wqkv_l.append(jnp.concatenate([wq.T, wk.T, wv.T], axis=1))
        bqkv_l.append(jnp.concatenate([bq, bk, bv]).reshape(1, 3 * d_model))
        wo_l.append(wo.T)
        bo_l.append(bo.reshape(1, d_model))
    return (jnp.stack(wqkv_l), jnp.stack(bqkv_l),
            jnp.stack(wo_l), jnp.stack(bo_l))


def _single_tensorcore_chip():
    """True for v5e / v6e (1 TC per chip); keep a parallel batch grid otherwise."""
    try:
        kind = jax.devices()[0].device_kind.lower()
    except Exception:
        return False
    return any(tag in kind for tag in ("v5e", "v5 lite", "v5lite",
                                       "v6e", "v6 lite", "v6lite"))


def encoder_forward(src, packed, *, heads, n_layer):
    """Encoder.forward on (B, L, d_model): all layers in one pallas_call."""
    B, L, d_model = src.shape
    d_k = d_model // heads
    wqkv, bqkv, wo, bo = packed

    # Single-TC chips: collapse the batch grid (one step, batched projections).
    # Multi-TC chips (v7x, megacore): one batch element per grid step, sharded
    # across TensorCores by the "parallel" semantics.
    bblk = B if _single_tensorcore_chip() else 1
    num_blocks = B // bblk

    kernel = functools.partial(
        encoder_kernel, n_layer=n_layer, heads=heads, d_k=d_k,
        d_model=d_model, bblk=bblk, seq_len=L)

    const3 = lambda i: (0, 0, 0)

    return pl.pallas_call(
        kernel,
        out_shape=jax.ShapeDtypeStruct((B, L, d_model), src.dtype),
        grid_spec=pltpu.PrefetchScalarGridSpec(
            num_scalar_prefetch=0,
            grid=(num_blocks,),
            in_specs=[
                pl.BlockSpec((bblk, L, d_model), lambda i: (i, 0, 0)),      # src
                pl.BlockSpec((n_layer, d_model, 3 * d_model), const3),      # W_qkv
                pl.BlockSpec((n_layer, 1, 3 * d_model), const3),            # b_qkv
                pl.BlockSpec((n_layer, d_model, d_model), const3),          # W_o
                pl.BlockSpec((n_layer, 1, d_model), const3),                # b_o
            ],
            out_specs=pl.BlockSpec((bblk, L, d_model), lambda i: (i, 0, 0)),
            scratch_shapes=[
                pltpu.VMEM((bblk, L, d_model), jnp.float32),   # activation
                pltpu.VMEM((bblk, L, d_model), jnp.float32),   # per-layer ctx
            ],
        ),
        compiler_params=pltpu.CompilerParams(dimension_semantics=("parallel",)),
    )(src, wqkv, bqkv, wo, bo)


# ----------------------------- pure-JAX reference -----------------------------

def reference_self_attn(x, params, *, heads):
    wq, bq, wk, bk, wv, bv, wo, bo = params
    B, L, d_model = x.shape
    d_k = d_model // heads
    q = x @ wq.T + bq
    k = x @ wk.T + bk
    v = x @ wv.T + bv
    q = q.reshape(B, L, heads, d_k).transpose(0, 2, 1, 3)
    k = k.reshape(B, L, heads, d_k).transpose(0, 2, 1, 3)
    v = v.reshape(B, L, heads, d_k).transpose(0, 2, 1, 3)
    att = jnp.einsum("bhqd,bhkd->bhqk", q, k) / math.sqrt(d_k)
    att = jax.nn.softmax(att, axis=-1)
    out = jnp.einsum("bhqk,bhkd->bhqd", att, v)
    out = out.transpose(0, 2, 1, 3).reshape(B, L, d_model)
    return out @ wo.T + bo


def reference_encoder(src, params_per_layer, *, heads):
    out = src
    for p in params_per_layer:
        out = reference_self_attn(out, p, heads=heads)
    return out


if __name__ == "__main__":
    batch, L = 2, 8
    d_model, heads = 32, 4
    n_layer = 2

    key0 = jax.random.PRNGKey(0)
    ks = jax.random.split(key0, 10)

    def linear_init(kw, kb, out_f, in_f):
        bound = 1.0 / math.sqrt(in_f)
        w = jax.random.uniform(kw, (out_f, in_f), jnp.float32, -bound, bound)
        b = jax.random.uniform(kb, (out_f,), jnp.float32, -bound, bound)
        return w, b

    wq, bq = linear_init(ks[0], ks[1], d_model, d_model)
    wk, bk = linear_init(ks[2], ks[3], d_model, d_model)
    wv, bv = linear_init(ks[4], ks[5], d_model, d_model)
    wo, bo = linear_init(ks[6], ks[7], d_model, d_model)
    layer_params = (wq, bq, wk, bk, wv, bv, wo, bo)

    # _get_clones(enc_layer, n_layer) deep-copies the layer -> identical params
    # at init.  Weights are packed once into stacked (n_layer, ...) operands.
    params_per_layer = [layer_params for _ in range(n_layer)]
    packed = pack_encoder_params(params_per_layer)

    src = jax.random.normal(ks[8], (batch, L, d_model), jnp.float32)

    out = encoder_forward(src, packed, heads=heads, n_layer=n_layer)
    out = jax.block_until_ready(out)

    ref = reference_encoder(src, params_per_layer, heads=heads)
    assert out.shape == (batch, L, d_model)

    # approx=True softmax reciprocal introduces ~1e-3-level relative error;
    # tolerance tightened vs. the previous 3e-2 so real bugs are not masked.
    rel_err = float(jnp.max(jnp.abs(out - ref)) / (jnp.max(jnp.abs(ref)) + 1e-6))
    assert rel_err < 5e-3, f"mismatch vs reference: rel_err={rel_err}"

    print("KERNEL_OK")
</pallas_src>

<mosaic_0001>
module attributes {stable_mosaic.version = 11 : i64} {
  func.func @encoder_kernel(%arg0: i32, %arg1: memref<1x8x32xf32, #tpu.memory_space<vmem>>, %arg2: memref<2x32x96xf32, #tpu.memory_space<vmem>>, %arg3: memref<2x1x96xf32, #tpu.memory_space<vmem>>, %arg4: memref<2x32x32xf32, #tpu.memory_space<vmem>>, %arg5: memref<2x1x32xf32, #tpu.memory_space<vmem>>, %arg6: memref<1x8x32xf32, #tpu.memory_space<vmem>>, %arg7: memref<1x8x32xf32, #tpu.memory_space<vmem>>, %arg8: memref<1x8x32xf32, #tpu.memory_space<vmem>>) attributes {dimension_semantics = [#tpu.dimension_semantics<parallel>], iteration_bounds = array<i64: 2>, scalar_prefetch = 0 : i64, scratch_operands = 2 : i64, tpu.core_type = #tpu.core_type<tc>, window_params = [{transform_indices = @transform_0, window_bounds = array<i64: 1, 8, 32>}, {pipeline_mode = #tpu.pipeline_mode<synchronous>, transform_indices = @transform_1, window_bounds = array<i64: 2, 32, 96>}, {pipeline_mode = #tpu.pipeline_mode<synchronous>, transform_indices = @transform_2, window_bounds = array<i64: 2, 1, 96>}, {pipeline_mode = #tpu.pipeline_mode<synchronous>, transform_indices = @transform_3, window_bounds = array<i64: 2, 32, 32>}, {pipeline_mode = #tpu.pipeline_mode<synchronous>, transform_indices = @transform_4, window_bounds = array<i64: 2, 1, 32>}, {transform_indices = @transform_5, window_bounds = array<i64: 1, 8, 32>}]} {
    %c0 = arith.constant 0 : index
    %c0_0 = arith.constant 0 : index
    %c0_1 = arith.constant 0 : index
    %0 = vector.load %arg1[%c0, %c0_0, %c0_1] : memref<1x8x32xf32, #tpu.memory_space<vmem>>, vector<1x8x32xf32>
    %c0_2 = arith.constant 0 : index
    %c0_3 = arith.constant 0 : index
    %c0_4 = arith.constant 0 : index
    %1 = vector.load %arg7[%c0_2, %c0_3, %c0_4] : memref<1x8x32xf32, #tpu.memory_space<vmem>>, vector<1x8x32xf32>
    tpu.vector_store %arg7[%c0_2, %c0_3, %c0_4], %0 {strides = array<i32>} : memref<1x8x32xf32, #tpu.memory_space<vmem>>, vector<1x8x32xf32>,
    %c0_5 = arith.constant 0 : index
    %c0_6 = arith.constant 0 : index
    %c0_7 = arith.constant 0 : index
    %2 = vector.load %arg7[%c0_5, %c0_6, %c0_7] : memref<1x8x32xf32, #tpu.memory_space<vmem>>, vector<1x8x32xf32>
    %3 = vector.shape_cast %2 : vector<1x8x32xf32> to vector<8x32xf32>
    %c0_8 = arith.constant 0 : index
    %c0_9 = arith.constant 0 : index
    %c0_10 = arith.constant 0 : index
    %4 = vector.load %arg2[%c0_8, %c0_9, %c0_10] : memref<2x32x96xf32, #tpu.memory_space<vmem>>, vector<1x32x96xf32>
    %5 = vector.shape_cast %4 : vector<1x32x96xf32> to vector<32x96xf32>
    %cst = arith.constant dense<0.000000e+00> : vector<8x96xf32>
    %6 = tpu.matmul %3, %5, %cst {dimension_numbers = #tpu.dot_dimension_numbers<[1], [0], [0], [1], [0, 0, 1, 1], [], []>} : vector<8x32xf32>, vector<32x96xf32>, vector<8x96xf32> -> vector<8x96xf32>
    %c0_11 = arith.constant 0 : index
    %c0_12 = arith.constant 0 : index
    %c0_13 = arith.constant 0 : index
    %7 = vector.load %arg3[%c0_11, %c0_12, %c0_13] : memref<2x1x96xf32, #tpu.memory_space<vmem>>, vector<1x1x96xf32>
    %8 = vector.shape_cast %7 : vector<1x1x96xf32> to vector<1x96xf32>
    %9 = vector.broadcast %8 : vector<1x96xf32> to vector<8x96xf32>
    %10 = arith.addf %6, %9 : vector<8x96xf32>
    %11 = vector.shape_cast %10 : vector<8x96xf32> to vector<1x8x96xf32>
    %12 = vector.extract_strided_slice %11 {offsets = [0, 0, 0], sizes = [1, 8, 8], strides = [1, 1, 1]} : vector<1x8x96xf32> to vector<1x8x8xf32>
    %13 = vector.shape_cast %12 : vector<1x8x8xf32> to vector<8x8xf32>
    %14 = vector.extract_strided_slice %11 {offsets = [0, 0, 32], sizes = [1, 8, 8], strides = [1, 1, 1]} : vector<1x8x96xf32> to vector<1x8x8xf32>
    %15 = vector.shape_cast %14 : vector<1x8x8xf32> to vector<8x8xf32>
    %16 = vector.extract_strided_slice %11 {offsets = [0, 0, 64], sizes = [1, 8, 8], strides = [1, 1, 1]} : vector<1x8x96xf32> to vector<1x8x8xf32>
    %17 = vector.shape_cast %16 : vector<1x8x8xf32> to vector<8x8xf32>
    %cst_14 = arith.constant dense<0.000000e+00> : vector<8x8xf32>
    %18 = tpu.matmul %13, %15, %cst_14 {dimension_numbers = #tpu.dot_dimension_numbers<[1], [1], [0], [0], [0, 0, 1, 0], [], []>} : vector<8x8xf32>, vector<8x8xf32>, vector<8x8xf32> -> vector<8x8xf32>
    %cst_15 = arith.constant 0.353553385 : f32
    %19 = vector.broadcast %cst_15 : f32 to vector<8x8xf32>
    %20 = arith.mulf %18, %19 : vector<8x8xf32>
    %cst_16 = arith.constant dense<0xFF800000> : vector<8xf32>
    %21 = vector.multi_reduction <maximumf>, %20, %cst_16 [1] : vector<8x8xf32> to vector<8xf32>
    %22 = vector.shape_cast %21 : vector<8xf32> to vector<8x1xf32>
    %23 = vector.broadcast %22 : vector<8x1xf32> to vector<8x8xf32>
    %24 = arith.subf %20, %23 : vector<8x8xf32>
    %25 = math.exp %24 : vector<8x8xf32>
    %cst_17 = arith.constant dense<0.000000e+00> : vector<8xf32>
    %26 = vector.multi_reduction <add>, %25, %cst_17 [1] : vector<8x8xf32> to vector<8xf32>
    %27 = vector.shape_cast %26 : vector<8xf32> to vector<8x1xf32>
    %28 = tpu.reciprocal %27 {approx = true} : vector<8x1xf32> -> vector<8x1xf32>
    %29 = vector.broadcast %28 : vector<8x1xf32> to vector<8x8xf32>
    %30 = arith.mulf %25, %29 : vector<8x8xf32>
    %cst_18 = arith.constant dense<0.000000e+00> : vector<8x8xf32>
    %31 = tpu.matmul %30, %17, %cst_18 {dimension_numbers = #tpu.dot_dimension_numbers<[1], [0], [0], [1], [0, 0, 1, 1], [], []>} : vector<8x8xf32>, vector<8x8xf32>, vector<8x8xf32> -> vector<8x8xf32>
    %c0_19 = arith.constant 0 : index
    %c0_20 = arith.constant 0 : index
    %c0_21 = arith.constant 0 : index
    %32 = vector.load %arg8[%c0_19, %c0_20, %c0_21] : memref<1x8x32xf32, #tpu.memory_space<vmem>>, vector<1x8x8xf32>
    %33 = vector.shape_cast %32 : vector<1x8x8xf32> to vector<8x8xf32>
    %34 = vector.shape_cast %31 : vector<8x8xf32> to vector<1x8x8xf32>
    tpu.vector_store %arg8[%c0_19, %c0_20, %c0_21], %34 {strides = array<i32>} : memref<1x8x32xf32, #tpu.memory_space<vmem>>, vector<1x8x8xf32>,
    %35 = vector.extract_strided_slice %11 {offsets = [0, 0, 8], sizes = [1, 8, 8], strides = [1, 1, 1]} : vector<1x8x96xf32> to vector<1x8x8xf32>
    %36 = vector.shape_cast %35 : vector<1x8x8xf32> to vector<8x8xf32>
    %37 = vector.extract_strided_slice %11 {offsets = [0, 0, 40], sizes = [1, 8, 8], strides = [1, 1, 1]} : vector<1x8x96xf32> to vector<1x8x8xf32>
    %38 = vector.shape_cast %37 : vector<1x8x8xf32> to vector<8x8xf32>
    %39 = vector.extract_strided_slice %11 {offsets = [0, 0, 72], sizes = [1, 8, 8], strides = [1, 1, 1]} : vector<1x8x96xf32> to vector<1x8x8xf32>
    %40 = vector.shape_cast %39 : vector<1x8x8xf32> to vector<8x8xf32>
    %cst_22 = arith.constant dense<0.000000e+00> : vector<8x8xf32>
    %41 = tpu.matmul %36, %38, %cst_22 {dimension_numbers = #tpu.dot_dimension_numbers<[1], [1], [0], [0], [0, 0, 1, 0], [], []>} : vector<8x8xf32>, vector<8x8xf32>, vector<8x8xf32> -> vector<8x8xf32>
    %cst_23 = arith.constant 0.353553385 : f32
    %42 = vector.broadcast %cst_23 : f32 to vector<8x8xf32>
    %43 = arith.mulf %41, %42 : vector<8x8xf32>
    %cst_24 = arith.constant dense<0xFF800000> : vector<8xf32>
    %44 = vector.multi_reduction <maximumf>, %43, %cst_24 [1] : vector<8x8xf32> to vector<8xf32>
    %45 = vector.shape_cast %44 : vector<8xf32> to vector<8x1xf32>
    %46 = vector.broadcast %45 : vector<8x1xf32> to vector<8x8xf32>
    %47 = arith.subf %43, %46 : vector<8x8xf32>
    %48 = math.exp %47 : vector<8x8xf32>
    %cst_25 = arith.constant dense<0.000000e+00> : vector<8xf32>
    %49 = vector.multi_reduction <add>, %48, %cst_25 [1] : vector<8x8xf32> to vector<8xf32>
    %50 = vector.shape_cast %49 : vector<8xf32> to vector<8x1xf32>
    %51 = tpu.reciprocal %50 {approx = true} : vector<8x1xf32> -> vector<8x1xf32>
    %52 = vector.broadcast %51 : vector<8x1xf32> to vector<8x8xf32>
    %53 = arith.mulf %48, %52 : vector<8x8xf32>
    %cst_26 = arith.constant dense<0.000000e+00> : vector<8x8xf32>
    %54 = tpu.matmul %53, %40, %cst_26 {dimension_numbers = #tpu.dot_dimension_numbers<[1], [0], [0], [1], [0, 0, 1, 1], [], []>} : vector<8x8xf32>, vector<8x8xf32>, vector<8x8xf32> -> vector<8x8xf32>
    %c0_27 = arith.constant 0 : index
    %c0_28 = arith.constant 0 : index
    %c8 = arith.constant 8 : index
    %55 = vector.load %arg8[%c0_27, %c0_28, %c8] : memref<1x8x32xf32, #tpu.memory_space<vmem>>, vector<1x8x8xf32>
    %56 = vector.shape_cast %55 : vector<1x8x8xf32> to vector<8x8xf32>
    %57 = vector.shape_cast %54 : vector<8x8xf32> to vector<1x8x8xf32>
    tpu.vector_store %arg8[%c0_27, %c0_28, %c8], %57 {strides = array<i32>} : memref<1x8x32xf32, #tpu.memory_space<vmem>>, vector<1x8x8xf32>,
    %58 = vector.extract_strided_slice %11 {offsets = [0, 0, 16], sizes = [1, 8, 8], strides = [1, 1, 1]} : vector<1x8x96xf32> to vector<1x8x8xf32>
    %59 = vector.shape_cast %58 : vector<1x8x8xf32> to vector<8x8xf32>
    %60 = vector.extract_strided_slice %11 {offsets = [0, 0, 48], sizes = [1, 8, 8], strides = [1, 1, 1]} : vector<1x8x96xf32> to vector<1x8x8xf32>
    %61 = vector.shape_cast %60 : vector<1x8x8xf32> to vector<8x8xf32>
    %62 = vector.extract_strided_slice %11 {offsets = [0, 0, 80], sizes = [1, 8, 8], strides = [1, 1, 1]} : vector<1x8x96xf32> to vector<1x8x8xf32>
    %63 = vector.shape_cast %62 : vector<1x8x8xf32> to vector<8x8xf32>
    %cst_29 = arith.constant dense<0.000000e+00> : vector<8x8xf32>
    %64 = tpu.matmul %59, %61, %cst_29 {dimension_numbers = #tpu.dot_dimension_numbers<[1], [1], [0], [0], [0, 0, 1, 0], [], []>} : vector<8x8xf32>, vector<8x8xf32>, vector<8x8xf32> -> vector<8x8xf32>
    %cst_30 = arith.constant 0.353553385 : f32
    %65 = vector.broadcast %cst_30 : f32 to vector<8x8xf32>
    %66 = arith.mulf %64, %65 : vector<8x8xf32>
    %cst_31 = arith.constant dense<0xFF800000> : vector<8xf32>
    %67 = vector.multi_reduction <maximumf>, %66, %cst_31 [1] : vector<8x8xf32> to vector<8xf32>
    %68 = vector.shape_cast %67 : vector<8xf32> to vector<8x1xf32>
    %69 = vector.broadcast %68 : vector<8x1xf32> to vector<8x8xf32>
    %70 = arith.subf %66, %69 : vector<8x8xf32>
    %71 = math.exp %70 : vector<8x8xf32>
    %cst_32 = arith.constant dense<0.000000e+00> : vector<8xf32>
    %72 = vector.multi_reduction <add>, %71, %cst_32 [1] : vector<8x8xf32> to vector<8xf32>
    %73 = vector.shape_cast %72 : vector<8xf32> to vector<8x1xf32>
    %74 = tpu.reciprocal %73 {approx = true} : vector<8x1xf32> -> vector<8x1xf32>
    %75 = vector.broadcast %74 : vector<8x1xf32> to vector<8x8xf32>
    %76 = arith.mulf %71, %75 : vector<8x8xf32>
    %cst_33 = arith.constant dense<0.000000e+00> : vector<8x8xf32>
    %77 = tpu.matmul %76, %63, %cst_33 {dimension_numbers = #tpu.dot_dimension_numbers<[1], [0], [0], [1], [0, 0, 1, 1], [], []>} : vector<8x8xf32>, vector<8x8xf32>, vector<8x8xf32> -> vector<8x8xf32>
    %c0_34 = arith.constant 0 : index
    %c0_35 = arith.constant 0 : index
    %c16 = arith.constant 16 : index
    %78 = vector.load %arg8[%c0_34, %c0_35, %c16] : memref<1x8x32xf32, #tpu.memory_space<vmem>>, vector<1x8x8xf32>
    %79 = vector.shape_cast %78 : vector<1x8x8xf32> to vector<8x8xf32>
    %80 = vector.shape_cast %77 : vector<8x8xf32> to vector<1x8x8xf32>
    tpu.vector_store %arg8[%c0_34, %c0_35, %c16], %80 {strides = array<i32>} : memref<1x8x32xf32, #tpu.memory_space<vmem>>, vector<1x8x8xf32>,
    %81 = vector.extract_strided_slice %11 {offsets = [0, 0, 24], sizes = [1, 8, 8], strides = [1, 1, 1]} : vector<1x8x96xf32> to vector<1x8x8xf32>
    %82 = vector.shape_cast %81 : vector<1x8x8xf32> to vector<8x8xf32>
    %83 = vector.extract_strided_slice %11 {offsets = [0, 0, 56], sizes = [1, 8, 8], strides = [1, 1, 1]} : vector<1x8x96xf32> to vector<1x8x8xf32>
    %84 = vector.shape_cast %83 : vector<1x8x8xf32> to vector<8x8xf32>
    %85 = vector.extract_strided_slice %11 {offsets = [0, 0, 88], sizes = [1, 8, 8], strides = [1, 1, 1]} : vector<1x8x96xf32> to vector<1x8x8xf32>
    %86 = vector.shape_cast %85 : vector<1x8x8xf32> to vector<8x8xf32>
    %cst_36 = arith.constant dense<0.000000e+00> : vector<8x8xf32>
    %87 = tpu.matmul %82, %84, %cst_36 {dimension_numbers = #tpu.dot_dimension_numbers<[1], [1], [0], [0], [0, 0, 1, 0], [], []>} : vector<8x8xf32>, vector<8x8xf32>, vector<8x8xf32> -> vector<8x8xf32>
    %cst_37 = arith.constant 0.353553385 : f32
    %88 = vector.broadcast %cst_37 : f32 to vector<8x8xf32>
    %89 = arith.mulf %87, %88 : vector<8x8xf32>
    %cst_38 = arith.constant dense<0xFF800000> : vector<8xf32>
    %90 = vector.multi_reduction <maximumf>, %89, %cst_38 [1] : vector<8x8xf32> to vector<8xf32>
    %91 = vector.shape_cast %90 : vector<8xf32> to vector<8x1xf32>
    %92 = vector.broadcast %91 : vector<8x1xf32> to vector<8x8xf32>
    %93 = arith.subf %89, %92 : vector<8x8xf32>
    %94 = math.exp %93 : vector<8x8xf32>
    %cst_39 = arith.constant dense<0.000000e+00> : vector<8xf32>
    %95 = vector.multi_reduction <add>, %94, %cst_39 [1] : vector<8x8xf32> to vector<8xf32>
    %96 = vector.shape_cast %95 : vector<8xf32> to vector<8x1xf32>
    %97 = tpu.reciprocal %96 {approx = true} : vector<8x1xf32> -> vector<8x1xf32>
    %98 = vector.broadcast %97 : vector<8x1xf32> to vector<8x8xf32>
    %99 = arith.mulf %94, %98 : vector<8x8xf32>
    %cst_40 = arith.constant dense<0.000000e+00> : vector<8x8xf32>
    %100 = tpu.matmul %99, %86, %cst_40 {dimension_numbers = #tpu.dot_dimension_numbers<[1], [0], [0], [1], [0, 0, 1, 1], [], []>} : vector<8x8xf32>, vector<8x8xf32>, vector<8x8xf32> -> vector<8x8xf32>
    %c0_41 = arith.constant 0 : index
    %c0_42 = arith.constant 0 : index
    %c24 = arith.constant 24 : index
    %101 = vector.load %arg8[%c0_41, %c0_42, %c24] : memref<1x8x32xf32, #tpu.memory_space<vmem>>, vector<1x8x8xf32>
    %102 = vector.shape_cast %101 : vector<1x8x8xf32> to vector<8x8xf32>
    %103 = vector.shape_cast %100 : vector<8x8xf32> to vector<1x8x8xf32>
    tpu.vector_store %arg8[%c0_41, %c0_42, %c24], %103 {strides = array<i32>} : memref<1x8x32xf32, #tpu.memory_space<vmem>>, vector<1x8x8xf32>,
    %c0_43 = arith.constant 0 : index
    %c0_44 = arith.constant 0 : index
    %c0_45 = arith.constant 0 : index
    %104 = vector.load %arg8[%c0_43, %c0_44, %c0_45] : memref<1x8x32xf32, #tpu.memory_space<vmem>>, vector<1x8x32xf32>
    %105 = vector.shape_cast %104 : vector<1x8x32xf32> to vector<8x32xf32>
    %c0_46 = arith.constant 0 : index
    %c0_47 = arith.constant 0 : index
    %c0_48 = arith.constant 0 : index
    %106 = vector.load %arg4[%c0_46, %c0_47, %c0_48] : memref<2x32x32xf32, #tpu.memory_space<vmem>>, vector<1x32x32xf32>
    %107 = vector.shape_cast %106 : vector<1x32x32xf32> to vector<32x32xf32>
    %cst_49 = arith.constant dense<0.000000e+00> : vector<8x32xf32>
    %108 = tpu.matmul %105, %107, %cst_49 {dimension_numbers = #tpu.dot_dimension_numbers<[1], [0], [0], [1], [0, 0, 1, 1], [], []>} : vector<8x32xf32>, vector<32x32xf32>, vector<8x32xf32> -> vector<8x32xf32>
    %c0_50 = arith.constant 0 : index
    %c0_51 = arith.constant 0 : index
    %c0_52 = arith.constant 0 : index
    %109 = vector.load %arg5[%c0_50, %c0_51, %c0_52] : memref<2x1x32xf32, #tpu.memory_space<vmem>>, vector<1x1x32xf32>
    %110 = vector.shape_cast %109 : vector<1x1x32xf32> to vector<1x32xf32>
    %111 = vector.broadcast %110 : vector<1x32xf32> to vector<8x32xf32>
    %112 = arith.addf %108, %111 : vector<8x32xf32>
    %113 = vector.shape_cast %112 : vector<8x32xf32> to vector<1x8x32xf32>
    %c0_53 = arith.constant 0 : index
    %c0_54 = arith.constant 0 : index
    %c0_55 = arith.constant 0 : index
    %114 = vector.load %arg7[%c0_53, %c0_54, %c0_55] : memref<1x8x32xf32, #tpu.memory_space<vmem>>, vector<1x8x32xf32>
    tpu.vector_store %arg7[%c0_53, %c0_54, %c0_55], %113 {strides = array<i32>} : memref<1x8x32xf32, #tpu.memory_space<vmem>>, vector<1x8x32xf32>,
    %c0_56 = arith.constant 0 : index
    %c0_57 = arith.constant 0 : index
    %c0_58 = arith.constant 0 : index
    %115 = vector.load %arg7[%c0_56, %c0_57, %c0_58] : memref<1x8x32xf32, #tpu.memory_space<vmem>>, vector<1x8x32xf32>
    %116 = vector.shape_cast %115 : vector<1x8x32xf32> to vector<8x32xf32>
    %c1 = arith.constant 1 : index
    %c0_59 = arith.constant 0 : index
    %c0_60 = arith.constant 0 : index
    %117 = vector.load %arg2[%c1, %c0_59, %c0_60] : memref<2x32x96xf32, #tpu.memory_space<vmem>>, vector<1x32x96xf32>
    %118 = vector.shape_cast %117 : vector<1x32x96xf32> to vector<32x96xf32>
    %cst_61 = arith.constant dense<0.000000e+00> : vector<8x96xf32>
    %119 = tpu.matmul %116, %118, %cst_61 {dimension_numbers = #tpu.dot_dimension_numbers<[1], [0], [0], [1], [0, 0, 1, 1], [], []>} : vector<8x32xf32>, vector<32x96xf32>, vector<8x96xf32> -> vector<8x96xf32>
    %c1_62 = arith.constant 1 : index
    %c0_63 = arith.constant 0 : index
    %c0_64 = arith.constant 0 : index
    %120 = vector.load %arg3[%c1_62, %c0_63, %c0_64] : memref<2x1x96xf32, #tpu.memory_space<vmem>>, vector<1x1x96xf32>
    %121 = vector.shape_cast %120 : vector<1x1x96xf32> to vector<1x96xf32>
    %122 = vector.broadcast %121 : vector<1x96xf32> to vector<8x96xf32>
    %123 = arith.addf %119, %122 : vector<8x96xf32>
    %124 = vector.shape_cast %123 : vector<8x96xf32> to vector<1x8x96xf32>
    %125 = vector.extract_strided_slice %124 {offsets = [0, 0, 0], sizes = [1, 8, 8], strides = [1, 1, 1]} : vector<1x8x96xf32> to vector<1x8x8xf32>
    %126 = vector.shape_cast %125 : vector<1x8x8xf32> to vector<8x8xf32>
    %127 = vector.extract_strided_slice %124 {offsets = [0, 0, 32], sizes = [1, 8, 8], strides = [1, 1, 1]} : vector<1x8x96xf32> to vector<1x8x8xf32>
    %128 = vector.shape_cast %127 : vector<1x8x8xf32> to vector<8x8xf32>
    %129 = vector.extract_strided_slice %124 {offsets = [0, 0, 64], sizes = [1, 8, 8], strides = [1, 1, 1]} : vector<1x8x96xf32> to vector<1x8x8xf32>
    %130 = vector.shape_cast %129 : vector<1x8x8xf32> to vector<8x8xf32>
    %cst_65 = arith.constant dense<0.000000e+00> : vector<8x8xf32>
    %131 = tpu.matmul %126, %128, %cst_65 {dimension_numbers = #tpu.dot_dimension_numbers<[1], [1], [0], [0], [0, 0, 1, 0], [], []>} : vector<8x8xf32>, vector<8x8xf32>, vector<8x8xf32> -> vector<8x8xf32>
    %cst_66 = arith.constant 0.353553385 : f32
    %132 = vector.broadcast %cst_66 : f32 to vector<8x8xf32>
    %133 = arith.mulf %131, %132 : vector<8x8xf32>
    %cst_67 = arith.constant dense<0xFF800000> : vector<8xf32>
    %134 = vector.multi_reduction <maximumf>, %133, %cst_67 [1] : vector<8x8xf32> to vector<8xf32>
    %135 = vector.shape_cast %134 : vector<8xf32> to vector<8x1xf32>
    %136 = vector.broadcast %135 : vector<8x1xf32> to vector<8x8xf32>
    %137 = arith.subf %133, %136 : vector<8x8xf32>
    %138 = math.exp %137 : vector<8x8xf32>
    %cst_68 = arith.constant dense<0.000000e+00> : vector<8xf32>
    %139 = vector.multi_reduction <add>, %138, %cst_68 [1] : vector<8x8xf32> to vector<8xf32>
    %140 = vector.shape_cast %139 : vector<8xf32> to vector<8x1xf32>
    %141 = tpu.reciprocal %140 {approx = true} : vector<8x1xf32> -> vector<8x1xf32>
    %142 = vector.broadcast %141 : vector<8x1xf32> to vector<8x8xf32>
    %143 = arith.mulf %138, %142 : vector<8x8xf32>
    %cst_69 = arith.constant dense<0.000000e+00> : vector<8x8xf32>
    %144 = tpu.matmul %143, %130, %cst_69 {dimension_numbers = #tpu.dot_dimension_numbers<[1], [0], [0], [1], [0, 0, 1, 1], [], []>} : vector<8x8xf32>, vector<8x8xf32>, vector<8x8xf32> -> vector<8x8xf32>
    %c0_70 = arith.constant 0 : index
    %c0_71 = arith.constant 0 : index
    %c0_72 = arith.constant 0 : index
    %145 = vector.load %arg8[%c0_70, %c0_71, %c0_72] : memref<1x8x32xf32, #tpu.memory_space<vmem>>, vector<1x8x8xf32>
    %146 = vector.shape_cast %145 : vector<1x8x8xf32> to vector<8x8xf32>
    %147 = vector.shape_cast %144 : vector<8x8xf32> to vector<1x8x8xf32>
    tpu.vector_store %arg8[%c0_70, %c0_71, %c0_72], %147 {strides = array<i32>} : memref<1x8x32xf32, #tpu.memory_space<vmem>>, vector<1x8x8xf32>,
    %148 = vector.extract_strided_slice %124 {offsets = [0, 0, 8], sizes = [1, 8, 8], strides = [1, 1, 1]} : vector<1x8x96xf32> to vector<1x8x8xf32>
    %149 = vector.shape_cast %148 : vector<1x8x8xf32> to vector<8x8xf32>
    %150 = vector.extract_strided_slice %124 {offsets = [0, 0, 40], sizes = [1, 8, 8], strides = [1, 1, 1]} : vector<1x8x96xf32> to vector<1x8x8xf32>
    %151 = vector.shape_cast %150 : vector<1x8x8xf32> to vector<8x8xf32>
    %152 = vector.extract_strided_slice %124 {offsets = [0, 0, 72], sizes = [1, 8, 8], strides = [1, 1, 1]} : vector<1x8x96xf32> to vector<1x8x8xf32>
    %153 = vector.shape_cast %152 : vector<1x8x8xf32> to vector<8x8xf32>
    %cst_73 = arith.constant dense<0.000000e+00> : vector<8x8xf32>
    %154 = tpu.matmul %149, %151, %cst_73 {dimension_numbers = #tpu.dot_dimension_numbers<[1], [1], [0], [0], [0, 0, 1, 0], [], []>} : vector<8x8xf32>, vector<8x8xf32>, vector<8x8xf32> -> vector<8x8xf32>
    %cst_74 = arith.constant 0.353553385 : f32
    %155 = vector.broadcast %cst_74 : f32 to vector<8x8xf32>
    %156 = arith.mulf %154, %155 : vector<8x8xf32>
    %cst_75 = arith.constant dense<0xFF800000> : vector<8xf32>
    %157 = vector.multi_reduction <maximumf>, %156, %cst_75 [1] : vector<8x8xf32> to vector<8xf32>
    %158 = vector.shape_cast %157 : vector<8xf32> to vector<8x1xf32>
    %159 = vector.broadcast %158 : vector<8x1xf32> to vector<8x8xf32>
    %160 = arith.subf %156, %159 : vector<8x8xf32>
    %161 = math.exp %160 : vector<8x8xf32>
    %cst_76 = arith.constant dense<0.000000e+00> : vector<8xf32>
    %162 = vector.multi_reduction <add>, %161, %cst_76 [1] : vector<8x8xf32> to vector<8xf32>
    %163 = vector.shape_cast %162 : vector<8xf32> to vector<8x1xf32>
    %164 = tpu.reciprocal %163 {approx = true} : vector<8x1xf32> -> vector<8x1xf32>
    %165 = vector.broadcast %164 : vector<8x1xf32> to vector<8x8xf32>
    %166 = arith.mulf %161, %165 : vector<8x8xf32>
    %cst_77 = arith.constant dense<0.000000e+00> : vector<8x8xf32>
    %167 = tpu.matmul %166, %153, %cst_77 {dimension_numbers = #tpu.dot_dimension_numbers<[1], [0], [0], [1], [0, 0, 1, 1], [], []>} : vector<8x8xf32>, vector<8x8xf32>, vector<8x8xf32> -> vector<8x8xf32>
    %c0_78 = arith.constant 0 : index
    %c0_79 = arith.constant 0 : index
    %c8_80 = arith.constant 8 : index
    %168 = vector.load %arg8[%c0_78, %c0_79, %c8_80] : memref<1x8x32xf32, #tpu.memory_space<vmem>>, vector<1x8x8xf32>
    %169 = vector.shape_cast %168 : vector<1x8x8xf32> to vector<8x8xf32>
    %170 = vector.shape_cast %167 : vector<8x8xf32> to vector<1x8x8xf32>
    tpu.vector_store %arg8[%c0_78, %c0_79, %c8_80], %170 {strides = array<i32>} : memref<1x8x32xf32, #tpu.memory_space<vmem>>, vector<1x8x8xf32>,
    %171 = vector.extract_strided_slice %124 {offsets = [0, 0, 16], sizes = [1, 8, 8], strides = [1, 1, 1]} : vector<1x8x96xf32> to vector<1x8x8xf32>
    %172 = vector.shape_cast %171 : vector<1x8x8xf32> to vector<8x8xf32>
    %173 = vector.extract_strided_slice %124 {offsets = [0, 0, 48], sizes = [1, 8, 8], strides = [1, 1, 1]} : vector<1x8x96xf32> to vector<1x8x8xf32>
    %174 = vector.shape_cast %173 : vector<1x8x8xf32> to vector<8x8xf32>
    %175 = vector.extract_strided_slice %124 {offsets = [0, 0, 80], sizes = [1, 8, 8], strides = [1, 1, 1]} : vector<1x8x96xf32> to vector<1x8x8xf32>
    %176 = vector.shape_cast %175 : vector<1x8x8xf32> to vector<8x8xf32>
    %cst_81 = arith.constant dense<0.000000e+00> : vector<8x8xf32>
    %177 = tpu.matmul %172, %174, %cst_81 {dimension_numbers = #tpu.dot_dimension_numbers<[1], [1], [0], [0], [0, 0, 1, 0], [], []>} : vector<8x8xf32>, vector<8x8xf32>, vector<8x8xf32> -> vector<8x8xf32>
    %cst_82 = arith.constant 0.353553385 : f32
    %178 = vector.broadcast %cst_82 : f32 to vector<8x8xf32>
    %179 = arith.mulf %177, %178 : vector<8x8xf32>
    %cst_83 = arith.constant dense<0xFF800000> : vector<8xf32>
    %180 = vector.multi_reduction <maximumf>, %179, %cst_83 [1] : vector<8x8xf32> to vector<8xf32>
    %181 = vector.shape_cast %180 : vector<8xf32> to vector<8x1xf32>
    %182 = vector.broadcast %181 : vector<8x1xf32> to vector<8x8xf32>
    %183 = arith.subf %179, %182 : vector<8x8xf32>
    %184 = math.exp %183 : vector<8x8xf32>
    %cst_84 = arith.constant dense<0.000000e+00> : vector<8xf32>
    %185 = vector.multi_reduction <add>, %184, %cst_84 [1] : vector<8x8xf32> to vector<8xf32>
    %186 = vector.shape_cast %185 : vector<8xf32> to vector<8x1xf32>
    %187 = tpu.reciprocal %186 {approx = true} : vector<8x1xf32> -> vector<8x1xf32>
    %188 = vector.broadcast %187 : vector<8x1xf32> to vector<8x8xf32>
    %189 = arith.mulf %184, %188 : vector<8x8xf32>
    %cst_85 = arith.constant dense<0.000000e+00> : vector<8x8xf32>
    %190 = tpu.matmul %189, %176, %cst_85 {dimension_numbers = #tpu.dot_dimension_numbers<[1], [0], [0], [1], [0, 0, 1, 1], [], []>} : vector<8x8xf32>, vector<8x8xf32>, vector<8x8xf32> -> vector<8x8xf32>
    %c0_86 = arith.constant 0 : index
    %c0_87 = arith.constant 0 : index
    %c16_88 = arith.constant 16 : index
    %191 = vector.load %arg8[%c0_86, %c0_87, %c16_88] : memref<1x8x32xf32, #tpu.memory_space<vmem>>, vector<1x8x8xf32>
    %192 = vector.shape_cast %191 : vector<1x8x8xf32> to vector<8x8xf32>
    %193 = vector.shape_cast %190 : vector<8x8xf32> to vector<1x8x8xf32>
    tpu.vector_store %arg8[%c0_86, %c0_87, %c16_88], %193 {strides = array<i32>} : memref<1x8x32xf32, #tpu.memory_space<vmem>>, vector<1x8x8xf32>,
    %194 = vector.extract_strided_slice %124 {offsets = [0, 0, 24], sizes = [1, 8, 8], strides = [1, 1, 1]} : vector<1x8x96xf32> to vector<1x8x8xf32>
    %195 = vector.shape_cast %194 : vector<1x8x8xf32> to vector<8x8xf32>
    %196 = vector.extract_strided_slice %124 {offsets = [0, 0, 56], sizes = [1, 8, 8], strides = [1, 1, 1]} : vector<1x8x96xf32> to vector<1x8x8xf32>
    %197 = vector.shape_cast %196 : vector<1x8x8xf32> to vector<8x8xf32>
    %198 = vector.extract_strided_slice %124 {offsets = [0, 0, 88], sizes = [1, 8, 8], strides = [1, 1, 1]} : vector<1x8x96xf32> to vector<1x8x8xf32>
    %199 = vector.shape_cast %198 : vector<1x8x8xf32> to vector<8x8xf32>
    %cst_89 = arith.constant dense<0.000000e+00> : vector<8x8xf32>
    %200 = tpu.matmul %195, %197, %cst_89 {dimension_numbers = #tpu.dot_dimension_numbers<[1], [1], [0], [0], [0, 0, 1, 0], [], []>} : vector<8x8xf32>, vector<8x8xf32>, vector<8x8xf32> -> vector<8x8xf32>
    %cst_90 = arith.constant 0.353553385 : f32
    %201 = vector.broadcast %cst_90 : f32 to vector<8x8xf32>
    %202 = arith.mulf %200, %201 : vector<8x8xf32>
    %cst_91 = arith.constant dense<0xFF800000> : vector<8xf32>
    %203 = vector.multi_reduction <maximumf>, %202, %cst_91 [1] : vector<8x8xf32> to vector<8xf32>
    %204 = vector.shape_cast %203 : vector<8xf32> to vector<8x1xf32>
    %205 = vector.broadcast %204 : vector<8x1xf32> to vector<8x8xf32>
    %206 = arith.subf %202, %205 : vector<8x8xf32>
    %207 = math.exp %206 : vector<8x8xf32>
    %cst_92 = arith.constant dense<0.000000e+00> : vector<8xf32>
    %208 = vector.multi_reduction <add>, %207, %cst_92 [1] : vector<8x8xf32> to vector<8xf32>
    %209 = vector.shape_cast %208 : vector<8xf32> to vector<8x1xf32>
    %210 = tpu.reciprocal %209 {approx = true} : vector<8x1xf32> -> vector<8x1xf32>
    %211 = vector.broadcast %210 : vector<8x1xf32> to vector<8x8xf32>
    %212 = arith.mulf %207, %211 : vector<8x8xf32>
    %cst_93 = arith.constant dense<0.000000e+00> : vector<8x8xf32>
    %213 = tpu.matmul %212, %199, %cst_93 {dimension_numbers = #tpu.dot_dimension_numbers<[1], [0], [0], [1], [0, 0, 1, 1], [], []>} : vector<8x8xf32>, vector<8x8xf32>, vector<8x8xf32> -> vector<8x8xf32>
    %c0_94 = arith.constant 0 : index
    %c0_95 = arith.constant 0 : index
    %c24_96 = arith.constant 24 : index
    %214 = vector.load %arg8[%c0_94, %c0_95, %c24_96] : memref<1x8x32xf32, #tpu.memory_space<vmem>>, vector<1x8x8xf32>
    %215 = vector.shape_cast %214 : vector<1x8x8xf32> to vector<8x8xf32>
    %216 = vector.shape_cast %213 : vector<8x8xf32> to vector<1x8x8xf32>
    tpu.vector_store %arg8[%c0_94, %c0_95, %c24_96], %216 {strides = array<i32>} : memref<1x8x32xf32, #tpu.memory_space<vmem>>, vector<1x8x8xf32>,
    %c0_97 = arith.constant 0 : index
    %c0_98 = arith.constant 0 : index
    %c0_99 = arith.constant 0 : index
    %217 = vector.load %arg8[%c0_97, %c0_98, %c0_99] : memref<1x8x32xf32, #tpu.memory_space<vmem>>, vector<1x8x32xf32>
    %218 = vector.shape_cast %217 : vector<1x8x32xf32> to vector<8x32xf32>
    %c1_100 = arith.constant 1 : index
    %c0_101 = arith.constant 0 : index
    %c0_102 = arith.constant 0 : index
    %219 = vector.load %arg4[%c1_100, %c0_101, %c0_102] : memref<2x32x32xf32, #tpu.memory_space<vmem>>, vector<1x32x32xf32>
    %220 = vector.shape_cast %219 : vector<1x32x32xf32> to vector<32x32xf32>
    %cst_103 = arith.constant dense<0.000000e+00> : vector<8x32xf32>
    %221 = tpu.matmul %218, %220, %cst_103 {dimension_numbers = #tpu.dot_dimension_numbers<[1], [0], [0], [1], [0, 0, 1, 1], [], []>} : vector<8x32xf32>, vector<32x32xf32>, vector<8x32xf32> -> vector<8x32xf32>
    %c1_104 = arith.constant 1 : index
    %c0_105 = arith.constant 0 : index
    %c0_106 = arith.constant 0 : index
    %222 = vector.load %arg5[%c1_104, %c0_105, %c0_106] : memref<2x1x32xf32, #tpu.memory_space<vmem>>, vector<1x1x32xf32>
    %223 = vector.shape_cast %222 : vector<1x1x32xf32> to vector<1x32xf32>
    %224 = vector.broadcast %223 : vector<1x32xf32> to vector<8x32xf32>
    %225 = arith.addf %221, %224 : vector<8x32xf32>
    %226 = vector.shape_cast %225 : vector<8x32xf32> to vector<1x8x32xf32>
    %c0_107 = arith.constant 0 : index
    %c0_108 = arith.constant 0 : index
    %c0_109 = arith.constant 0 : index
    %227 = vector.load %arg7[%c0_107, %c0_108, %c0_109] : memref<1x8x32xf32, #tpu.memory_space<vmem>>, vector<1x8x32xf32>
    tpu.vector_store %arg7[%c0_107, %c0_108, %c0_109], %226 {strides = array<i32>} : memref<1x8x32xf32, #tpu.memory_space<vmem>>, vector<1x8x32xf32>,
    %c0_110 = arith.constant 0 : index
    %c0_111 = arith.constant 0 : index
    %c0_112 = arith.constant 0 : index
    %228 = vector.load %arg7[%c0_110, %c0_111, %c0_112] : memref<1x8x32xf32, #tpu.memory_space<vmem>>, vector<1x8x32xf32>
    %c0_113 = arith.constant 0 : index
    %c0_114 = arith.constant 0 : index
    %c0_115 = arith.constant 0 : index
    %229 = vector.load %arg6[%c0_113, %c0_114, %c0_115] : memref<1x8x32xf32, #tpu.memory_space<vmem>>, vector<1x8x32xf32>
    tpu.vector_store %arg6[%c0_113, %c0_114, %c0_115], %228 {strides = array<i32>} : memref<1x8x32xf32, #tpu.memory_space<vmem>>, vector<1x8x32xf32>,
    return
  }
  func.func @transform_0(%arg0: i32) -> (i32, i32, i32) {
    %c0_i32 = arith.constant 0 : i32
    %c0_i32_0 = arith.constant 0 : i32
    %c0_i32_1 = arith.constant 0 : i32
    return %arg0, %c0_i32, %c0_i32_0 : i32, i32, i32
  }
  func.func @transform_1(%arg0: i32) -> (i32, i32, i32) {
    %c0_i32 = arith.constant 0 : i32
    %c0_i32_0 = arith.constant 0 : i32
    %c0_i32_1 = arith.constant 0 : i32
    %c0_i32_2 = arith.constant 0 : i32
    return %c0_i32, %c0_i32_0, %c0_i32_1 : i32, i32, i32
  }
  func.func @transform_2(%arg0: i32) -> (i32, i32, i32) {
    %c0_i32 = arith.constant 0 : i32
    %c0_i32_0 = arith.constant 0 : i32
    %c0_i32_1 = arith.constant 0 : i32
    %c0_i32_2 = arith.constant 0 : i32
    return %c0_i32, %c0_i32_0, %c0_i32_1 : i32, i32, i32
  }
  func.func @transform_3(%arg0: i32) -> (i32, i32, i32) {
    %c0_i32 = arith.constant 0 : i32
    %c0_i32_0 = arith.constant 0 : i32
    %c0_i32_1 = arith.constant 0 : i32
    %c0_i32_2 = arith.constant 0 : i32
    return %c0_i32, %c0_i32_0, %c0_i32_1 : i32, i32, i32
  }
  func.func @transform_4(%arg0: i32) -> (i32, i32, i32) {
    %c0_i32 = arith.constant 0 : i32
    %c0_i32_0 = arith.constant 0 : i32
    %c0_i32_1 = arith.constant 0 : i32
    %c0_i32_2 = arith.constant 0 : i32
    return %c0_i32, %c0_i32_0, %c0_i32_1 : i32, i32, i32
  }
  func.func @transform_5(%arg0: i32) -> (i32, i32, i32) {
    %c0_i32 = arith.constant 0 : i32
    %c0_i32_0 = arith.constant 0 : i32
    %c0_i32_1 = arith.constant 0 : i32
    return %arg0, %c0_i32, %c0_i32_0 : i32, i32, i32
  }
}

</mosaic_0001>

<bundles_post_ra>
// kernel: tpu_custom_call.1
= control target key start
LH: loop header
LB: loop body
LE: loop exit
PB: predicated region body
PF: predicated region fallthrough
CT: control target
= control target key end

     0   :  { %10 = vsyncpa [#allocation5], 0  ;;  %s1811_s0 = inlined_call_operand.hbm [shape: f32[2,8,32], index: 0, kind: input, shape index: {}]   ;;  %s1812_s1 = inlined_call_operand.hbm [shape: f32[2,32,96], index: 1, kind: input, shape index: {}]   ;;  %s1813_s2 = inlined_call_operand.hbm [shape: f32[2,1,96], index: 2, kind: input, shape index: {}]   ;;  %s1814_s3 = inlined_call_operand.hbm [shape: f32[2,32,32], index: 3, kind: input, shape index: {}]   ;;  %s1815_s4 = inlined_call_operand.vmem [shape: f32[2,1,32], index: 4, kind: input, shape index: {}]   ;;  %s1816_s5 = inlined_call_operand.hbm [shape: f32[2,8,32], index: 5, kind: output, shape index: {}]  }
   0x1   :  { %12 = vsyncpa [#allocation5 + $0x1], 0 }
   0x2   :  { %13 = vsyncpa [#allocation8], 0 }
   0x3   :  { %14 = vsyncpa [#allocation11], 0 }
   0x4   :  { %15 = vsyncpa [#allocation6], 0 }
   0x5   :  { %17 = vsyncpa [#allocation6 + $0x1], 0  ;;  %s1533_s18 = smov 0   ;;  %s1535_s19 = smov 0  }
   0x6   :  { %s1537_s20 = smov 0   ;;  %s1539_s21 = smov 0  }
   0x7 LB: > { %s175_s24 = sshll.u32 %s1812_s1, 4  ;;  %s1557_s25 = sadd.s32 4294967295, %s1480_s21   ;;  %s1480_s21 = sphi %s1539_s21, %s1831_s21   ;;  %s1476_s20 = sphi %s1537_s20, %s1830_s20   ;;  %s1472_s19 = sphi %s1535_s19, %s1829_s19   ;;  %s1468_s18 = sphi %s1533_s18, %s1828_s18   ;;  %s176_s24 = int_to_ptr.hbm [resolvable:$true] %s175_s24 }
   0x8   : > { %p1109_p0 = scmp.ge.s32.totalorder %s1480_s21, 1  ;;  %p44_p1 = scmp.eq.s32.totalorder %s1557_s25, 0 }
   0x9   : > { %p164_p2 = scmp.lt.s32.totalorder %s1480_s21, 3  ;;  %s1482_s27 = smov [#allocation7]  }
   0xa   : > { %s177_s28 = sshll.u32 %s1482_s27, 4  ;;  %s189_s6 = sshll.u32 %s1813_s2, 4  ;;  %s178_s28 = int_to_ptr.vmem [resolvable:$true] %s177_s28  ;;  %s190_s6 = int_to_ptr.hbm [resolvable:$true] %s189_s6 }
   0xb   : > { %p1562_p3 = pnand %p1109_p0, %p164_p2  ;;  %s1483_s8 = smov [#allocation9]  }
   0xc   : > { %s191_s9 = sshll.u32 %s1483_s8, 4  ;;  %s1484_s10 = smov 128   ;;  %s192_s9 = int_to_ptr.vmem [resolvable:$true] %s191_s9 }
   0xd   : > { %p1171_p4 = pneg %p1562_p3  ;;  %s1485_s11 = smov 8  }
   0xe   : > { %s1486_s12 = smov 16   ;;  %s1487_s13 = smov 1  }
   0xf   : > { %p1574_p6 = pnand %p1171_p4, %p44_p1  ;;  %s203_s16 = sshll.u32 %s1814_s3, 4  ;;  %s204_s16 = int_to_ptr.hbm [resolvable:$true] %s203_s16 }
  0x10   : > { %s1488_s17 = smov [#allocation10]   ;;  %s1108_s23 = sadd.s32 4294967294, %s1480_s21  }
  0x11   : > { %1174 = dma.hbm_to_vmem [thread:$0]  (!%p1574_p6), %s176_s24, 1024, %s178_s28, [#allocation8], %s1484_s10, %s1484_s10, %s1485_s11  }
  0x12   : > { %1177 = dma.hbm_to_vmem [thread:$0]  (!%p1574_p6), %s190_s6, 32, %s192_s9, [#allocation8], %s1486_s12, %s1486_s12, %s1487_s13  }
  0x13   : > { %s205_s22 = sshll.u32 %s1488_s17, 4  ;;  %s1589_s24 = sadd.s32 1, %s1480_s21   ;;  %s206_s22 = int_to_ptr.vmem [resolvable:$true] %s205_s22 }
  0x14   : > { %1180 = dma.hbm_to_vmem [thread:$0]  (!%p1574_p6), %s204_s16, 1024, %s206_s22, [#allocation11], %s1484_s10, %s1484_s10, %s1485_s11  }
  0x15   : > { %s30_s27 = sadd.s32 1, %s1476_s20  ;;  %s27_s28 = ssub.s32 %s1480_s21, %s1589_s24 }
  0x16   : > { %p37_p7 = scmp.ne.s32.totalorder %s1476_s20, %s1472_s19  ;;  %p28_p8 = scmp.eq.s32.totalorder %s27_s28, 0 }
  0x17   : > { %p38_p9 = scmp.eq.s32.totalorder %s1480_s21, 0  ;;  %p43_p10 = scmp.ne.s32.totalorder %s1472_s19, %s1468_s18 }
  0x18   : > { %p151_p11 = scmp.eq.s32.totalorder %s1557_s25, 1  ;;  %p157_p0 = scmp.eq.s32.totalorder %s1108_s23, 1 }
  0x19   : > { %s1601_s29 = scalar_select %p28_p8, %s1476_s20, %s30_s27  }
  0x1a   : > { %p1605_p12 = por %p44_p1, %p43_p10  ;;  %p1609_p13 = por %p151_p11, %p37_p7 }
  0x1b   : > { %p39_p2 = por %p38_p9, %p37_p7  ;;  %s222_s7 = sand.u32 1, %s1476_s20  }
  0x1c   : > { %p1614_p4 = por %p157_p0, %p43_p10  ;;  %p1192_p6 = scmp.lt.s32.totalorder %s1480_s21, 2 }
  0x1d   : > { %s1114_s9 = sshll.u32 %s222_s7, 3  ;;  %s1115_s10 = sshll.u32 %s1480_s21, 3 }
  0x1e   : > { %s230_s13 = scalar_lea.hbm %s1811_s0, %s1115_s10  ;;  %s226_s15 = scalar_lea.vmem [#allocation4], %s1114_s9 }
  0x1f   : > { %s232_s14 = sshll.u32 %s230_s13, 4  ;;  %s234_s16 = sshll.u32 %s226_s15, 4  ;;  %s233_s14 = int_to_ptr.hbm [resolvable:$true] %s232_s14  ;;  %s235_s16 = int_to_ptr.vmem [resolvable:$true] %s234_s16 }
  0x20   : > { %p1623_p8 = pnand %p1192_p6, %p39_p2  ;;  %s223_s22 = scalar_lea.sflag [#allocation5], %s222_s7 }
  0x21   : > { %s1376_s23 = sshra.s32 %s233_s14, 4  ;;  %s1383_s9 = scalar_lea.hbm %s1811_s0, 16  ;;  %s1377_s23 = int_to_ptr.hbm [resolvable:$true] %s1376_s23 }
  0x22   : > { %s1378_s27 = scalar_lea.hbm %s1377_s23, 8  ;;  %p1380_p9 = pneg %p1623_p8 }
  0x23   : > { %p1379_p7 = scmp.ne.s32.totalorder %s1377_s23, %s1378_s27  ;;  %p1384_p0 = scmp.lt.s32.totalorder %s1377_s23, %s1811_s0 }
  0x24   : > { %p1385_p2 = scmp.lt.s32.totalorder %s1383_s9, %s1378_s27 }
  0x25   : > { %p1381_p10 = pnand %p1380_p9, %p1379_p7 }
  0x26   : > { %p1386_p6 = por %p1385_p2, %p1384_p0 }
  0x27   : > { %p1382_p11 = pneg %p1381_p10 }
  0x29   : > { %p1387_p5 = pnand %p1386_p6, %p1382_p11 }
  0x2b   : > { %1390 = shalt.err (!%p1387_p5)
}
  0x2c   : > { %1184 = dma.hbm_to_vmem [thread:$0]  (!%p1623_p8), %s233_s14, 128, %s235_s16, %s223_s22  }
  0x2d   : > { %243 = sbr.rel (%p1562_p3) target bundleno = 2174 (0x87e), region = 40  ;;  %s1640_s7 = sand.u32 (!%p1562_p3), 1, %s1472_s19  }
  0x2e   : > { %s1817_s13 = sshll.u32 (!%p1562_p3), %s1640_s7, 3  ;;  %s246_s15 = scalar_lea.sflag (!%p1562_p3), [#allocation5], %s1640_s7 }
  0x2f   : > { %s249_s23 = scalar_lea.vmem (!%p1562_p3), [#allocation4], %s1817_s13 }
  0x32   : > { %1451 = dma.done.wait (%p1605_p12), %s246_s15, 128  }
  0x33   : > { %1453 = vsyncadd (%p1605_p12), %s246_s15, 4294967168 }
  0x34   : > { %1455 = dma.done.wait (%p44_p1), [#allocation8], 1056  }
  0x35   : > { %1457 = vsyncadd (%p44_p1), [#allocation8], 4294966240 }
  0x36   : > { %1459 = dma.done.wait (%p44_p1), [#allocation11], 1024  }
  0x37   : > { %1461 = vsyncadd (%p44_p1), [#allocation11], 4294966272  ;;  %vm293_vm0 = vcmask 261120   ;;  %v299_v0 = vld [vmem:[#allocation7 + $0x18] sm:$0xff]  ;;  %v298_v1 = vld [vmem:[#allocation7 + $0x10] sm:$0xff]  ;;  %s1489_s26 = smov 72  }
  0x38   : > { %319 = vmatpush.msra.mxu0 %v299_v0  ;;  %v292_v2 = vld [vmem:[%s249_s23] sm:$0xff]  ;;  %v297_v3 = vld [vmem:[#allocation7 + $0x8] sm:$0xff]  ;;  %v296_v4 = vld [vmem:[#allocation7] sm:$0xff]  ;;  %s1490_s30 = smov 120   ;;  %s1491_s14 = smov 96   ;;  %vm330_vm1 = vcmask 64512  }
  0x39   : > { %294 = vst.msk [vmem:[#allocation2] sm:$0xff] %vm293_vm0, %v292_v2  ;;  %v1250_v6 = vld [vmem:[#allocation9] ss:$0 sm:$0xff]  ;;  %s1492_s16 = smov 112   ;;  %s1493_s17 = smov 80   ;;  %vm464_vm2 = vcmask 130112  }
  0x3a   : > { %320 = vmatpush.msra.mxu0 %v298_v1  ;;  %s1494_s22 = smov 88   ;;  %s1495_s27 = smov 104   ;;  %vm536_vm3 = vcmask 195712   ;;  %vm608_vm4 = vcmask 261312  }
  0x3b   : > { %s1496_s28 = smov 64   ;;  %s1497_s10 = smov 40  }
  0x3c   : > { %321 = vmatpush.msra.mxu0 %v297_v3  ;;  %s1498_s9 = smov 56   ;;  %s1499_s11 = smov 48  }
  0x3d   : > { %s1500_s12 = smov 16   ;;  %s1501_s15 = smov 8  }
  0x3e   : > { %322 = vmatpush.msra.mxu0 %v296_v4  ;;  %s1818_s23 = smov 24   ;;  %v614_v4 = vld [vmem:[#allocation10 + $0x18] sm:$0xff]  ;;  %s1825_s13 = smov 24  }
  0x40   : > { %v295_v5 = vld [vmem:[#allocation2] sm:$0xff] }
  0x41   : > { %1122 = vmatmul.msk.f32.vlgmr.msra.gmra.mxu0 %vm293_vm0, %v295_v5  ;;  %v613_v5 = vld [vmem:[#allocation10 + $0x10] sm:$0xff] }
  0xbe   : > { %v324_v7 = vpop.f32.mrf.mxu0 }
  0xbf   : > { %v1660_v8 = vadd.f32 %v1250_v6, %v324_v7  ;;  %v612_v6 = vld [vmem:[#allocation10 + $0x8] sm:$0xff]  ;;  %v611_v7 = vld [vmem:[#allocation10] sm:$0xff] }
  0xc1   : > { %540 = vrot.lane.b32.xlu2 %v1660_v8, %s1489_s26  ;;  %394 = vrot.lane.b32.xlu1 %v1660_v8, %s1490_s30 }
  0xc2   : > { %328 = vrot.lane.b32.xlu0 %v1660_v8, %s1491_s14 }
  0xc9   : > { %466 = vrot.lane.b32.xlu2 %v1660_v8, %s1492_s16  ;;  %468 = vrot.lane.b32.xlu1 %v1660_v8, %s1493_s17 }
  0xca   : > { %396 = vrot.lane.b32.xlu0 %v1660_v8, %s1494_s22 }
  0xd2   : > { %538 = vrot.lane.b32.xlu0 %v1660_v8, %s1495_s27 }
 0x11b   : > { %v541_v9 = vpop.permute.xlu2 %540 }
 0x11c   : > { %1132 = vmatpush.xpose.msk.msrb.mxu0 %vm330_vm1, %v541_v9 }
 0x123   : > { %v467_v14 = vpop.permute.xlu2 %466 }
 0x133   : > { %v395_v10 = vpop.permute.xlu1 %394 }
 0x134   : > { %v329_v11 = vpop.permute.xlu0 %328 }
 0x135   : > { %1123 = vmatpush.xpose.msk.msra.mxu1 %vm330_vm1, %v329_v11 }
 0x138   : > { %1124 = vmatmul.msk.f32.vlgmr.msra.gmra.mxu1 %vm330_vm1, %v1660_v8 }
 0x13b   : > { %v469_v12 = vpop.permute.xlu1 %468 }
 0x13c   : > { %v397_v13 = vpop.permute.xlu0 %396  ;;  %1129 = vmatpush.xpose.msk.msrb.mxu1 %vm330_vm1, %v469_v12  ;;  %v648_v12 = vld [vmem:[#allocation7 + $0x38] sm:$0xff] }
 0x13d   : > { %1126 = vmatpush.xpose.msk.msra.mxu3 %vm330_vm1, %v397_v13  ;;  %v647_v13 = vld [vmem:[#allocation7 + $0x30] sm:$0xff] }
 0x140   : > { %1127 = vmatmul.msk.f32.vlgmr.msra.gmra.mxu3 %vm330_vm1, %v395_v10  ;;  %1130 = vmatmul.msk.f32.vlgmr.msrb.gmra.mxu1 %vm330_vm1, %v467_v14  ;;  %v646_v14 = vld [vmem:[#allocation7 + $0x28] sm:$0xff] }
 0x141   : > { %634 = vmatpush.msra.mxu1 %v614_v4 }
 0x143   : > { %635 = vmatpush.msra.mxu1 %v613_v5 }
 0x144   : > { %v539_v15 = vpop.permute.xlu0 %538 }
 0x145   : > { %1133 = vmatmul.msk.f32.vlgmr.msrb.gmra.mxu0 %vm330_vm1, %v539_v15  ;;  %636 = vmatpush.msra.mxu1 %v612_v6  ;;  %v645_v15 = vld [vmem:[#allocation7 + $0x20] sm:$0xff] }
 0x147   : > { %637 = vmatpush.msra.mxu1 %v611_v7 }
 0x1b5   : > { %v352_v16 = vpop.f32.mrf.mxu1 }
 0x1b6   : > { %v355_v17 = vmul.f32 0.35355338, %v352_v16  ;;  %v1251_v16 = vld [vmem:[%s1815_s4] ss:$0 sm:$0xff] }
 0x1b8   : > { %v356_v18 = vsel %vm330_vm1, %v355_v17, -inf }
 0x1b9   : > { %357 = vmax.xlane.f32.xlu1 %v356_v18 }
 0x1bd   : > { %v491_v19 = vpop.f32.mrf.mxu1 }
 0x1be   : > { %v494_v20 = vmul.f32 0.35355338, %v491_v19 }
 0x1c0   : > { %v495_v21 = vsel %vm330_vm1, %v494_v20, -inf }
 0x1c1   : > { %496 = vmax.xlane.f32.xlu0 %v495_v21 }
 0x1c2   : > { %v563_v25 = vpop.f32.mrf.mxu0 }
 0x1c3   : > { %v419_v22 = vpop.f32.mrf.mxu3  ;;  %v566_v26 = vmul.f32 0.35355338, %v563_v25 }
 0x1c4   : > { %v422_v23 = vmul.f32 0.35355338, %v419_v22 }
 0x1c5   : > { %v567_v27 = vsel %vm330_vm1, %v566_v26, -inf }
 0x1c6   : > { %v423_v24 = vsel %vm330_vm1, %v422_v23, -inf }
 0x1c7   : > { %424 = vmax.xlane.f32.xlu2 %v423_v24 }
 0x1cf   : > { %568 = vmax.xlane.f32.xlu2 %v567_v27 }
 0x1d5   : > { %367 = vrot.lane.b32.xlu0 %v1660_v8, %s1496_s28 }
 0x1dd   : > { %578 = vrot.lane.b32.xlu0 %v1660_v8, %s1497_s10 }
 0x22c   : > { %v358_v28 = vpop.xlane.xlu1 %357 }
 0x22d   : > { %v359_v29 = vsub.f32 %v355_v17, %v358_v28 }
 0x22f   : > { %v360_v30 = vmul.f32 1.442695, %v359_v29 }
 0x231   : > { %1254 = vpow2.f32 %v360_v30 }
 0x234   : > { %v497_v31 = vpop.xlane.xlu0 %496 }
 0x235   : > { %v498_v32 = vsub.f32 %v494_v20, %v497_v31  ;;  %v1252_v20 = vld [vmem:[#allocation9 + $0x1] ss:$0 sm:$0xff] }
 0x237   : > { %v1255_v33 = vpop.eup %1254  ;;  %v499_v34 = vmul.f32 1.442695, %v498_v32 }
 0x238   : > { %v362_v35 = vsel %vm330_vm1, %v1255_v33, 0.0 }
 0x239   : > { %1256 = vpow2.f32 %v499_v34  ;;  %363 = vadd.xlane.f32.xlu1 %v362_v35 }
 0x23a   : > { %v425_v36 = vpop.xlane.xlu2 %424 }
 0x23b   : > { %v426_v41 = vsub.f32 %v422_v23, %v425_v36 }
 0x23d   : > { %v427_v44 = vmul.f32 1.442695, %v426_v41 }
 0x23f   : > { %v1257_v37 = vpop.eup %1256 }
 0x240   : > { %v501_v38 = vsel %vm330_vm1, %v1257_v37, 0.0 }
 0x241   : > { %502 = vadd.xlane.f32.xlu1 %v501_v38 }
 0x242   : > { %v569_v39 = vpop.xlane.xlu2 %568 }
 0x243   : > { %v570_v40 = vsub.f32 %v566_v26, %v569_v39 }
 0x245   : > { %v571_v42 = vmul.f32 1.442695, %v570_v40 }
 0x247   : > { %1258 = vpow2.f32 %v571_v42  ;;  %v368_v43 = vpop.permute.xlu0 %367 }
 0x248   : > { %388 = vmatpush.msra.mxu2 %v368_v43  ;;  %1260 = vpow2.f32 %v427_v44 }
 0x24d   : > { %v1259_v45 = vpop.eup %1258 }
 0x24e   : > { %v573_v46 = vsel %vm330_vm1, %v1259_v45, 0.0  ;;  %v1261_v47 = vpop.eup %1260 }
 0x24f   : > { %574 = vadd.xlane.f32.xlu2 %v573_v46  ;;  %v429_v48 = vsel %vm330_vm1, %v1261_v47, 0.0  ;;  %v579_v56 = vpop.permute.xlu0 %578 }
 0x257   : > { %430 = vadd.xlane.f32.xlu2 %v429_v48 }
 0x25a   : > { %434 = vrot.lane.b32.xlu1 %v1660_v8, %s1498_s9 }
 0x26f   : > { %506 = vrot.lane.b32.xlu2 %v1660_v8, %s1499_s11 }
 0x2ac   : > { %v364_v49 = vpop.xlane.xlu1 %363 }
 0x2ad   : > { %1262 = vrcp.f32 %v364_v49 }
 0x2b3   : > { %v1263_v50 = vpop.eup %1262 }
 0x2b4   : > { %v366_v51 = vmul.f32 %v1263_v50, %v1255_v33  ;;  %v503_v53 = vpop.xlane.xlu1 %502 }
 0x2b5   : > { %1264 = vrcp.f32 %v503_v53 }
 0x2b6   : > { %1125 = vmatmul.msk.f32.vlgmr.msra.gmra.mxu2 %vm330_vm1, %v366_v51 }
 0x2bb   : > { %v1265_v57 = vpop.eup %1264 }
 0x2bc   : > { %v505_v61 = vmul.f32 %v1265_v57, %v1257_v37 }
 0x2c2   : > { %v575_v52 = vpop.xlane.xlu2 %574 }
 0x2ca   : > { %v431_v54 = vpop.xlane.xlu2 %430 }
 0x2cb   : > { %1266 = vrcp.f32 %v431_v54 }
 0x2cc   : > { %v435_v55 = vpop.permute.xlu1 %434  ;;  %1268 = vrcp.f32 %v575_v52 }
 0x2cd   : > { %455 = vmatpush.msrb.mxu2 %v435_v55 }
 0x2cf   : > { %599 = vmatpush.msra.mxu2 %v579_v56 }
 0x2d1   : > { %v1267_v58 = vpop.eup %1266 }
 0x2d2   : > { %v507_v59 = vpop.permute.xlu2 %506  ;;  %v433_v60 = vmul.f32 %v1267_v58, %v1261_v47  ;;  %v1269_v62 = vpop.eup %1268 }
 0x2d3   : > { %527 = vmatpush.msrb.mxu3 %v507_v59  ;;  %v577_v63 = vmul.f32 %v1269_v62, %v1259_v45 }
 0x2d4   : > { %1128 = vmatmul.msk.f32.vlgmr.msrb.gmra.mxu2 %vm330_vm1, %v433_v60  ;;  %1131 = vmatmul.msk.f32.vlgmr.msrb.gmra.mxu3 %vm330_vm1, %v505_v61 }
 0x2d5   : > { %669 = vmatpush.msra.mxu3 %v648_v12 }
 0x2d7   : > { %670 = vmatpush.msra.mxu3 %v647_v13 }
 0x2d9   : > { %671 = vmatpush.msra.mxu3 %v646_v14 }
 0x2db   : > { %672 = vmatpush.msra.mxu3 %v645_v15 }
 0x2dc   : > { %1134 = vmatmul.msk.f32.vlgmr.msra.gmra.mxu2 %vm330_vm1, %v577_v63 }
 0x339   : > { %v390_v0 = vpop.f32.mrf.mxu2 }
 0x33a   : > { %393 = vst.msk [vmem:[#allocation3] sm:$0xff] %vm330_vm1, %v390_v0 }
 0x357   : > { %v457_v1 = vpop.f32.mrf.mxu2  ;;  %v529_v2 = vpop.f32.mrf.mxu3 }
 0x358   : > { %533 = vrot.lane.b32.xlu1 %v529_v2, %s1500_s12  ;;  %461 = vrot.lane.b32.xlu0 %v457_v1, %s1501_s15 }
 0x35f   : > { %v601_v3 = vpop.f32.mrf.mxu2 }
 0x360   : > { %605 = vrot.lane.b32.xlu0 %v601_v3, %s1818_s23 }
 0x3ca   : > { %v534_v8 = vpop.permute.xlu1 %533  ;;  %v462_v9 = vpop.permute.xlu0 %461 }
 0x3cb   : > { %465 = vst.msk [vmem:[#allocation3] sm:$0xff] %vm464_vm2, %v462_v9 }
 0x3cc   : > { %537 = vst.msk [vmem:[#allocation3] sm:$0xff] %vm536_vm3, %v534_v8 }
 0x3d2   : > { %v606_v10 = vpop.permute.xlu0 %605 }
 0x3d3   : > { %609 = vst.msk [vmem:[#allocation3] sm:$0xff] %vm608_vm4, %v606_v10 }
 0x3da   : > { %v610_v11 = vld [vmem:[#allocation3] sm:$0xff] }
 0x3db   : > { %1135 = vmatmul.msk.f32.vlgmr.msra.gmra.mxu1 %vm293_vm0, %v610_v11 }
 0x458   : > { %v639_v17 = vpop.f32.mrf.mxu1 }
 0x459   : > { %v640_v18 = vadd.f32 %v1251_v16, %v639_v17 }
 0x45b   : > { %642 = vst.msk [vmem:[#allocation2] sm:$0xff] %vm293_vm0, %v640_v18  ;;  %v961_v18 = vld [vmem:[#allocation10 + $0x38] sm:$0xff] }
 0x462   : > { %v643_v19 = vld [vmem:[#allocation2] sm:$0xff] }
 0x463   : > { %1136 = vmatmul.msk.f32.vlgmr.msra.gmra.mxu3 %vm293_vm0, %v643_v19  ;;  %v960_v19 = vld [vmem:[#allocation10 + $0x30] sm:$0xff] }
 0x4e6   : > { %v674_v21 = vpop.f32.mrf.mxu3 }
 0x4e7   : > { %v1718_v22 = vadd.f32 %v1252_v20, %v674_v21  ;;  %v959_v20 = vld [vmem:[#allocation10 + $0x28] sm:$0xff]  ;;  %v958_v21 = vld [vmem:[#allocation10 + $0x20] sm:$0xff] }
 0x4e9   : > { %743 = vrot.lane.b32.xlu0 %v1718_v22, %s1490_s30  ;;  %745 = vrot.lane.b32.xlu1 %v1718_v22, %s1494_s22 }
 0x4ea   : > { %678 = vrot.lane.b32.xlu2 %v1718_v22, %s1491_s14  ;;  %s1152_s14 = sshll.u32 %s1557_s25, 3 }
 0x4eb   : > { %s1004_s22 = scalar_lea.hbm %s1816_s5, %s1152_s14 }
 0x4f1   : > { %814 = vrot.lane.b32.xlu0 %v1718_v22, %s1492_s16  ;;  %887 = vrot.lane.b32.xlu1 %v1718_v22, %s1489_s26 }
 0x4f2   : > { %816 = vrot.lane.b32.xlu2 %v1718_v22, %s1493_s17 }
 0x4fa   : > { %885 = vrot.lane.b32.xlu2 %v1718_v22, %s1495_s27  ;;  %s1826_s27 = sshll.u32 %s1640_s7, 3 }
 0x544   : > { %v679_v23 = vpop.permute.xlu2 %678 }
 0x545   : > { %1137 = vmatpush.xpose.msk.msra.mxu0 %vm330_vm1, %v679_v23 }
 0x548   : > { %1138 = vmatmul.msk.f32.vlgmr.msra.gmra.mxu0 %vm330_vm1, %v1718_v22 }
 0x54c   : > { %v817_v24 = vpop.permute.xlu2 %816 }
 0x54d   : > { %1143 = vmatpush.xpose.msk.msrb.mxu0 %vm330_vm1, %v817_v24 }
 0x551   : > { %982 = vmatpush.msra.mxu0 %v961_v18 }
 0x553   : > { %983 = vmatpush.msra.mxu0 %v960_v19 }
 0x554   : > { %v886_v29 = vpop.permute.xlu2 %885 }
 0x555   : > { %984 = vmatpush.msra.mxu0 %v959_v20 }
 0x557   : > { %985 = vmatpush.msra.mxu0 %v958_v21 }
 0x55b   : > { %v744_v25 = vpop.permute.xlu0 %743  ;;  %v746_v26 = vpop.permute.xlu1 %745 }
 0x55c   : > { %1140 = vmatpush.xpose.msk.msrb.mxu1 %vm330_vm1, %v746_v26  ;;  %v1253_v26 = vld [vmem:[%s1815_s4 + $0x1] ss:$0 sm:$0xff] }
 0x55f   : > { %1141 = vmatmul.msk.f32.vlgmr.msrb.gmra.mxu1 %vm330_vm1, %v744_v25 }
 0x563   : > { %v815_v27 = vpop.permute.xlu0 %814  ;;  %v888_v28 = vpop.permute.xlu1 %887 }
 0x564   : > { %1144 = vmatmul.msk.f32.vlgmr.msrb.gmra.mxu0 %vm330_vm1, %v815_v27  ;;  %1146 = vmatpush.xpose.msk.msra.mxu1 %vm330_vm1, %v888_v28 }
 0x567   : > { %1147 = vmatmul.msk.f32.vlgmr.msra.gmra.mxu1 %vm330_vm1, %v886_v29 }
 0x5c5   : > { %v701_v30 = vpop.f32.mrf.mxu0 }
 0x5c6   : > { %v704_v31 = vmul.f32 0.35355338, %v701_v30 }
 0x5c8   : > { %v705_v32 = vsel %vm330_vm1, %v704_v31, -inf }
 0x5c9   : > { %706 = vmax.xlane.f32.xlu1 %v705_v32 }
 0x5dc   : > { %v768_v33 = vpop.f32.mrf.mxu1 }
 0x5dd   : > { %v771_v34 = vmul.f32 0.35355338, %v768_v33 }
 0x5df   : > { %v772_v35 = vsel %vm330_vm1, %v771_v34, -inf }
 0x5e0   : > { %773 = vmax.xlane.f32.xlu0 %v772_v35 }
 0x5e1   : > { %v839_v36 = vpop.f32.mrf.mxu0 }
 0x5e2   : > { %v842_v37 = vmul.f32 0.35355338, %v839_v36 }
 0x5e4   : > { %v910_v38 = vpop.f32.mrf.mxu1  ;;  %v843_v39 = vsel %vm330_vm1, %v842_v37, -inf }
 0x5e5   : > { %v913_v40 = vmul.f32 0.35355338, %v910_v38  ;;  %844 = vmax.xlane.f32.xlu2 %v843_v39 }
 0x5e7   : > { %v914_v41 = vsel %vm330_vm1, %v913_v40, -inf }
 0x5e8   : > { %915 = vmax.xlane.f32.xlu1 %v914_v41 }
 0x5f4   : > { %716 = vrot.lane.b32.xlu0 %v1718_v22, %s1496_s28  ;;  %s291_s28 = scalar_lea.vmem [#allocation12], %s1826_s27 }
 0x63c   : > { %v707_v42 = vpop.xlane.xlu1 %706 }
 0x63d   : > { %v708_v43 = vsub.f32 %v704_v31, %v707_v42 }
 0x63f   : > { %v709_v44 = vmul.f32 1.442695, %v708_v43 }
 0x641   : > { %1270 = vpow2.f32 %v709_v44 }
 0x647   : > { %v1271_v45 = vpop.eup %1270 }
 0x648   : > { %v711_v46 = vsel %vm330_vm1, %v1271_v45, 0.0 }
 0x649   : > { %712 = vadd.xlane.f32.xlu0 %v711_v46 }
 0x653   : > { %v774_v47 = vpop.xlane.xlu0 %773 }
 0x654   : > { %v775_v48 = vsub.f32 %v771_v34, %v774_v47 }
 0x656   : > { %v776_v49 = vmul.f32 1.442695, %v775_v48 }
 0x658   : > { %1272 = vpow2.f32 %v776_v49  ;;  %v845_v50 = vpop.xlane.xlu2 %844 }
 0x659   : > { %v846_v51 = vsub.f32 %v842_v37, %v845_v50 }
 0x65b   : > { %v847_v52 = vmul.f32 1.442695, %v846_v51  ;;  %v916_v53 = vpop.xlane.xlu1 %915 }
 0x65c   : > { %v917_v54 = vsub.f32 %v913_v40, %v916_v53 }
 0x65d   : > { %1274 = vpow2.f32 %v847_v52  ;;  %925 = vrot.lane.b32.xlu0 %v1718_v22, %s1497_s10  ;;  %s1006_s10 = sshll.u32 %s291_s28, 4  ;;  %s1007_s10 = int_to_ptr.vmem [resolvable:$true] %s1006_s10 }
 0x65e   : > { %v1273_v55 = vpop.eup %1272  ;;  %v918_v56 = vmul.f32 1.442695, %v917_v54 }
 0x65f   : > { %v778_v57 = vsel %vm330_vm1, %v1273_v55, 0.0 }
 0x660   : > { %1276 = vpow2.f32 %v918_v56  ;;  %779 = vadd.xlane.f32.xlu2 %v778_v57 }
 0x663   : > { %v1275_v58 = vpop.eup %1274 }
 0x664   : > { %v849_v59 = vsel %vm330_vm1, %v1275_v58, 0.0 }
 0x665   : > { %850 = vadd.xlane.f32.xlu1 %v849_v59 }
 0x666   : > { %v1277_v60 = vpop.eup %1276  ;;  %v717_v61 = vpop.permute.xlu0 %716 }
 0x667   : > { %737 = vmatpush.msrb.mxu2 %v717_v61  ;;  %v920_v62 = vsel %vm330_vm1, %v1277_v60, 0.0 }
 0x668   : > { %921 = vadd.xlane.f32.xlu2 %v920_v62 }
 0x67e   : > { %783 = vrot.lane.b32.xlu1 %v1718_v22, %s1498_s9  ;;  %s1008_s9 = sshll.u32 %s1004_s22, 4  ;;  %s1009_s9 = int_to_ptr.hbm [resolvable:$true] %s1008_s9 }
 0x680   : > { %854 = vrot.lane.b32.xlu2 %v1718_v22, %s1499_s11  ;;  %s994_s11 = scalar_lea.sflag [#allocation6], %s1640_s7 }
 0x6bc   : > { %v713_v63 = vpop.xlane.xlu0 %712 }
 0x6bd   : > { %1278 = vrcp.f32 %v713_v63 }
 0x6c3   : > { %v1279_v0 = vpop.eup %1278 }
 0x6c4   : > { %v715_v1 = vmul.f32 %v1279_v0, %v1271_v45 }
 0x6c6   : > { %1139 = vmatmul.msk.f32.vlgmr.msrb.gmra.mxu2 %vm330_vm1, %v715_v1 }
 0x6cf   : > { %v926_v11 = vpop.permute.xlu0 %925 }
 0x6d3   : > { %v780_v2 = vpop.xlane.xlu2 %779 }
 0x6d8   : > { %v851_v3 = vpop.xlane.xlu1 %850 }
 0x6d9   : > { %1280 = vrcp.f32 %v851_v3 }
 0x6da   : > { %1282 = vrcp.f32 %v780_v2 }
 0x6db   : > { %v922_v4 = vpop.xlane.xlu2 %921 }
 0x6dc   : > { %1284 = vrcp.f32 %v922_v4 }
 0x6df   : > { %v1281_v5 = vpop.eup %1280 }
 0x6e0   : > { %v853_v6 = vmul.f32 %v1281_v5, %v1275_v58  ;;  %v1283_v8 = vpop.eup %1282 }
 0x6e1   : > { %v782_v9 = vmul.f32 %v1283_v8, %v1273_v55 }
 0x6e2   : > { %v1285_v12 = vpop.eup %1284 }
 0x6e3   : > { %v855_v7 = vpop.permute.xlu2 %854  ;;  %v924_v13 = vmul.f32 %v1285_v12, %v1277_v60 }
 0x6e4   : > { %875 = vmatpush.msra.mxu2 %v855_v7 }
 0x6e5   : > { %1145 = vmatmul.msk.f32.vlgmr.msra.gmra.mxu2 %vm330_vm1, %v853_v6 }
 0x6f0   : > { %v784_v10 = vpop.permute.xlu1 %783 }
 0x6f1   : > { %804 = vmatpush.msrb.mxu3 %v784_v10 }
 0x6f2   : > { %1142 = vmatmul.msk.f32.vlgmr.msrb.gmra.mxu3 %vm330_vm1, %v782_v9 }
 0x6f3   : > { %946 = vmatpush.msra.mxu3 %v926_v11 }
 0x6fa   : > { %1148 = vmatmul.msk.f32.vlgmr.msra.gmra.mxu3 %vm330_vm1, %v924_v13 }
 0x749   : > { %v739_v14 = vpop.f32.mrf.mxu2 }
 0x74a   : > { %742 = vst.msk [vmem:[#allocation3] sm:$0xff] %vm330_vm1, %v739_v14 }
 0x768   : > { %v877_v15 = vpop.f32.mrf.mxu2 }
 0x769   : > { %881 = vrot.lane.b32.xlu1 %v877_v15, %s1500_s12  ;;  %s1420_s12 = sshra.s32 %s1009_s9, 4  ;;  %s1421_s12 = int_to_ptr.hbm [resolvable:$true] %s1420_s12 }
 0x76a   : > { %s1422_s25 = scalar_lea.hbm %s1421_s12, 8  ;;  %p1427_p12 = scmp.lt.s32.totalorder %s1421_s12, %s1816_s5 }
 0x76b   : > { %p1423_p1 = scmp.ne.s32.totalorder %s1421_s12, %s1422_s25 }
 0x76d   : > { %p1424_p3 = pnand %p1423_p1, %p1609_p13 }
 0x76f   : > { %p1425_p5 = pneg %p1424_p3 }
 0x775   : > { %v806_v16 = vpop.f32.mrf.mxu3 }
 0x776   : > { %810 = vrot.lane.b32.xlu0 %v806_v16, %s1501_s15 }
 0x77d   : > { %v948_v17 = vpop.f32.mrf.mxu3 }
 0x77e   : > { %952 = vrot.lane.b32.xlu2 %v948_v17, %s1825_s13  ;;  %s1426_s13 = scalar_lea.hbm %s1816_s5, 16 }
 0x77f   : > { %p1428_p8 = scmp.lt.s32.totalorder %s1426_s13, %s1422_s25 }
 0x781   : > { %p1429_p7 = por %p1428_p8, %p1427_p12 }
 0x783   : > { %p1430_p9 = pnand %p1429_p7, %p1425_p5 }
 0x7d8   : > { %v953_v24 = vpop.permute.xlu2 %952 }
 0x7db   : > { %v882_v23 = vpop.permute.xlu1 %881 }
 0x7e8   : > { %v811_v22 = vpop.permute.xlu0 %810 }
 0x7e9   : > { %813 = vst.msk [vmem:[#allocation3] sm:$0xff] %vm464_vm2, %v811_v22 }
 0x7ea   : > { %884 = vst.msk [vmem:[#allocation3] sm:$0xff] %vm536_vm3, %v882_v23 }
 0x7eb   : > { %955 = vst.msk [vmem:[#allocation3] sm:$0xff] %vm608_vm4, %v953_v24 }
 0x7f2   : > { %v956_v25 = vld [vmem:[#allocation3] sm:$0xff] }
 0x7f3   : > { %1150 = vmatmul.msk.f32.vlgmr.msra.gmra.mxu0 %vm293_vm0, %v956_v25 }
 0x870   : > { %v987_v27 = vpop.f32.mrf.mxu0 }
 0x871   : > { %v988_v28 = vadd.f32 %v1253_v26, %v987_v27 }
 0x873   : > { %990 = vst.msk [vmem:[#allocation2] sm:$0xff] %vm293_vm0, %v988_v28 }
 0x87a   : > { %v991_v29 = vld [vmem:[#allocation2] sm:$0xff] }
 0x87b   : > { %992 = vst.msk [vmem:[%s291_s28] sm:$0xff] %vm293_vm0, %v991_v29 }
 0x87c   : > { %1433 = shalt.err (!%p1430_p9)
}
 0x87d   : > { %1169 = dma.vmem_to_hbm [thread:$0]  (%p1609_p13), %s1007_s10, 128, %s1009_s9, %s994_s11  }
 0x87e PF: > { %s1020_s7 = sand.u32 1, %s1468_s18   ;;  %p1827_p10 = scmp.ge.s32.totalorder %s1480_s21, 2 }
 0x87f   : > { %s1021_s14 = scalar_lea.sflag [#allocation6], %s1020_s7 }
 0x880   : > { %p1186_p11 = pnand %p1827_p10, %p1614_p4 }
 0x882   : > { %p1187_p0 = pneg %p1186_p11 }
 0x884   : > { %1463 = dma.done.wait (%p1187_p0), %s1021_s14, 128  }
 0x885   : > { %1465 = vsyncadd (%p1187_p0), %s1021_s14, 4294967168  ;;  %p20_p2 = scmp.ge.s32.totalorder %s1589_s24, 4   ;;  %s1828_s18 = smov %s1472_s19 }
 0x886   : > { %s1829_s19 = smov %s1476_s20  ;;  %s1830_s20 = smov %s1601_s29 }
 0x887   : > { %s1831_s21 = smov %s1589_s24  ;;  %22 = sbr.rel (!%p20_p2) target bundleno = 7 (0x7), region = 101 }
 0x88c   :  { %1027 = vsyncpa [#allocation5], 1 }
 0x88d   :  { %1029 = vsyncpa [#allocation5 + $0x1], 1 }
 0x88e   :  { %1030 = vsyncpa [#allocation8], 1 }
 0x88f   :  { %1031 = vsyncpa [#allocation11], 1 }
 0x890   :  { %1032 = vsyncpa [#allocation6], 1 }
 0x891   :  { %1034 = vsyncpa [#allocation6 + $0x1], 1 }

</bundles_post_ra>
